<compile_context>
chip_gen: v7x
topology: tpu7x:2x2x1
jax: 0.10.0
libtpu: 0.0.40
codegen_flags: <defaults>
</compile_context>

<pallas_src>
import numpy as np
import jax
import jax.numpy as jnp
from jax import lax
from jax.experimental import pallas as pl
from jax.experimental.pallas import tpu as pltpu

# ----------------------------- config (small, consistent with module) ------
HIDDEN = 32          # bert.hidden_size
MAX_SPAN = 8         # arg.max_span_size
EMBED = 32           # arg.embedding_size (used for every projection)
N_SPANS = 24         # number of candidate spans
N_ANCHOR = 8         # anchors == positives == |iou_weights|
MARGIN = 0.2
EPS = 1e-6           # torch.pairwise_distance default eps

_VMEM = pl.BlockSpec(memory_space=pltpu.MemorySpace.VMEM)
_SMEM = pl.BlockSpec(memory_space=pltpu.MemorySpace.SMEM)


# ----------------------------- fused kernel --------------------------------
def _fused_kernel(span_ref, w_span_ref, b_span_ref,
                  w_a_ref, b_a_ref, w_p_ref, b_p_ref,
                  iou_ref, lw_ref, out_ref):
    f32 = jnp.float32
    bf16 = jnp.bfloat16

    # spans_embed = relu(span_feats @ w_span + b_span) for ALL spans (once).
    spans = jnp.maximum(
        jnp.dot(span_ref[...].astype(bf16), w_span_ref[...].astype(bf16),
                preferred_element_type=f32) + b_span_ref[...], 0.0)
    spans_bf = spans.astype(bf16)

    # Project every span through both heads (one MXU push each); subsets are
    # taken below as static, sublane-aligned slices.
    a_all = jnp.maximum(
        jnp.dot(spans_bf, w_a_ref[...].astype(bf16),
                preferred_element_type=f32) + b_a_ref[...], 0.0)   # anchor head
    p_all = jnp.maximum(
        jnp.dot(spans_bf, w_p_ref[...].astype(bf16),
                preferred_element_type=f32) + b_p_ref[...], 0.0)   # positive head

    # TODO(synk): boolean-mask indexing (dynamic output shapes) of the
    # original module is replaced by the static synthetic index layout:
    #   anchors = spans 0..7, positives = 8..15, negatives = 16..23,
    #   boundary anchors / positives = the same sets reversed.
    a_type = a_all[0:N_ANCHOR]                      # [A, E]
    p_type = p_all[N_ANCHOR:2 * N_ANCHOR]           # [A, E]
    n_all = p_all[2 * N_ANCHOR:N_SPANS]             # [Nn, E]

    # Reversed (boundary) sets via an exact reverse-permutation matmul
    # (f32 0/1 selection matrix -> exact row copy, no in-kernel gather).
    rows = lax.broadcasted_iota(jnp.int32, (N_ANCHOR, N_ANCHOR), 0)
    cols = lax.broadcasted_iota(jnp.int32, (N_ANCHOR, N_ANCHOR), 1)
    perm = (rows + cols == N_ANCHOR - 1).astype(f32)
    a_bnd = jnp.dot(perm, a_type, preferred_element_type=f32)
    p_bnd = jnp.dot(perm, p_type, preferred_element_type=f32)

    iou = iou_ref[...]                              # [A, 1]

    def contrastive(a, p, n):
        # torch.pairwise_distance: ||x1 - x2 + eps||_2
        d_ap = a - p + EPS
        ap = jnp.sqrt(jnp.sum(d_ap * d_ap, axis=-1, keepdims=True))      # [A,1]
        # explicit difference tensor (exact, no cancellation): [A, Nn, E]
        d_an = a[:, None, :] - n[None, :, :] + EPS
        an = jnp.sqrt(jnp.sum(d_an * d_an, axis=-1))                     # [A,Nn]
        an_min = jnp.min(an, axis=1, keepdims=True)                      # [A,1]

        w_ap = ap * iou                                                  # [A,1]
        # torch: (an_min[None,:] * iou[:,None]).min(dim=1)
        #   min_j(iou_i * an_min_j) == iou_i*min(an_min) if iou_i >= 0
        #                           == iou_i*max(an_min) otherwise (exact identity)
        g_min = jnp.min(an_min)
        g_max = jnp.max(an_min)
        w_an = jnp.where(iou >= 0.0, iou * g_min, iou * g_max)           # [A,1]

        return jnp.mean(jnp.maximum(w_ap - w_an + MARGIN, 0.0))

    loss = contrastive(a_type, p_type, n_all)
    boundary_loss = contrastive(a_bnd, p_bnd, n_all)

    # total_loss = type_loss_weight * loss + boundary_loss_weight * boundary
    out_ref[0] = lw_ref[0] * loss + lw_ref[1] * boundary_loss


# ----------------------------- forward glue --------------------------------
@jax.jit
def my_model_forward(params, span_feats, iou_weights):
    lw = jnp.concatenate([params["type_loss_weight"],
                          params["boundary_loss_weight"]]).astype(jnp.float32)

    total = pl.pallas_call(
        _fused_kernel,
        out_shape=jax.ShapeDtypeStruct((1,), jnp.float32),
        in_specs=[_VMEM,   # span_feats            [N_SPANS, HIDDEN+MAX_SPAN]
                  _VMEM,   # w_span                [HIDDEN+MAX_SPAN, E]
                  _VMEM,   # b_span                [1, E]
                  _VMEM,   # w_anchor              [E, E]
                  _VMEM,   # b_anchor              [1, E]
                  _VMEM,   # w_positive            [E, E]
                  _VMEM,   # b_positive            [1, E]
                  _VMEM,   # iou                   [A, 1]
                  _SMEM],  # [type_loss_weight, boundary_loss_weight]
        out_specs=_SMEM,
    )(span_feats,
      params["w_span"], params["b_span"].reshape(1, EMBED),
      params["w_anchor"], params["b_anchor"].reshape(1, EMBED),
      params["w_positive"], params["b_positive"].reshape(1, EMBED),
      iou_weights.reshape(N_ANCHOR, 1).astype(jnp.float32),
      lw)
    return total                                     # shape (1,)


# ----------------------------- main -----------------------------------------
if __name__ == "__main__":
    key = jax.random.PRNGKey(0)
    ks = jax.random.split(key, 10)

    span_in = HIDDEN + MAX_SPAN
    params = {
        "w_span": jax.random.normal(ks[0], (span_in, EMBED), jnp.float32) * 0.05,
        "b_span": jax.random.normal(ks[1], (EMBED,), jnp.float32) * 0.01,
        "w_anchor": jax.random.normal(ks[2], (EMBED, EMBED), jnp.float32) * 0.05,
        "b_anchor": jax.random.normal(ks[3], (EMBED,), jnp.float32) * 0.01,
        "w_positive": jax.random.normal(ks[4], (EMBED, EMBED), jnp.float32) * 0.05,
        "b_positive": jax.random.normal(ks[5], (EMBED,), jnp.float32) * 0.01,
        # boundary_embed is declared in __init__ but never used in forward.
        "w_boundary": jax.random.normal(ks[6], (EMBED, EMBED), jnp.float32) * 0.05,
        "b_boundary": jax.random.normal(ks[7], (EMBED,), jnp.float32) * 0.01,
        "type_loss_weight": jnp.array([1.0], jnp.float32),
        "boundary_loss_weight": jnp.array([1.0], jnp.float32),
    }

    # TODO(synk): BERT encoder + torch.randn span-width embedding replaced by
    # deterministic synthetic span features of the shape the Linear expects.
    span_feats = jax.random.normal(ks[8], (N_SPANS, span_in), jnp.float32)
    iou_weights = jax.random.uniform(ks[9], (N_ANCHOR,), jnp.float32)

    # The synthetic index sets the fused kernel encodes statically; verify.
    anchor_idx = np.arange(0, N_ANCHOR)
    positive_idx = np.arange(N_ANCHOR, 2 * N_ANCHOR)
    negative_idx = np.arange(2 * N_ANCHOR, N_SPANS)
    boundary_anchor_idx = np.arange(N_ANCHOR - 1, -1, -1)
    boundary_positive_idx = np.arange(2 * N_ANCHOR - 1, N_ANCHOR - 1, -1)
    assert np.array_equal(boundary_anchor_idx, anchor_idx[::-1])
    assert np.array_equal(boundary_positive_idx, positive_idx[::-1])
    assert np.array_equal(negative_idx, np.arange(2 * N_ANCHOR, N_SPANS))

    total_loss = my_model_forward(params, span_feats, iou_weights)
    total_loss = jax.block_until_ready(total_loss)
    assert total_loss.shape == (1,) and jnp.isfinite(total_loss).all()
    print("KERNEL_OK")
</pallas_src>

<mosaic_0001>
module attributes {stable_mosaic.version = 11 : i64} {
  func.func @_fused_kernel(%arg0: memref<24x40xf32, #tpu.memory_space<vmem>>, %arg1: memref<40x32xf32, #tpu.memory_space<vmem>>, %arg2: memref<1x32xf32, #tpu.memory_space<vmem>>, %arg3: memref<32x32xf32, #tpu.memory_space<vmem>>, %arg4: memref<1x32xf32, #tpu.memory_space<vmem>>, %arg5: memref<32x32xf32, #tpu.memory_space<vmem>>, %arg6: memref<1x32xf32, #tpu.memory_space<vmem>>, %arg7: memref<8x1xf32, #tpu.memory_space<vmem>>, %arg8: memref<2xf32, #tpu.memory_space<smem>>, %arg9: memref<1xf32, #tpu.memory_space<smem>>) attributes {dimension_semantics = [], scalar_prefetch = 0 : i64, scratch_operands = 0 : i64, tpu.core_type = #tpu.core_type<tc>} {
    %c0 = arith.constant 0 : index
    %c0_0 = arith.constant 0 : index
    %0 = vector.load %arg0[%c0, %c0_0] : memref<24x40xf32, #tpu.memory_space<vmem>>, vector<24x40xf32>
    %1 = arith.truncf %0 : vector<24x40xf32> to vector<24x40xbf16>
    %c0_1 = arith.constant 0 : index
    %c0_2 = arith.constant 0 : index
    %2 = vector.load %arg1[%c0_1, %c0_2] : memref<40x32xf32, #tpu.memory_space<vmem>>, vector<40x32xf32>
    %3 = arith.truncf %2 : vector<40x32xf32> to vector<40x32xbf16>
    %cst = arith.constant dense<0.000000e+00> : vector<24x32xf32>
    %4 = tpu.matmul %1, %3, %cst {dimension_numbers = #tpu.dot_dimension_numbers<[1], [0], [0], [1], [0, 0, 1, 1], [], []>} : vector<24x40xbf16>, vector<40x32xbf16>, vector<24x32xf32> -> vector<24x32xf32>
    %c0_3 = arith.constant 0 : index
    %c0_4 = arith.constant 0 : index
    %5 = vector.load %arg2[%c0_3, %c0_4] : memref<1x32xf32, #tpu.memory_space<vmem>>, vector<1x32xf32>
    %6 = vector.broadcast %5 : vector<1x32xf32> to vector<24x32xf32>
    %7 = arith.addf %4, %6 : vector<24x32xf32>
    %cst_5 = arith.constant 0.000000e+00 : f32
    %8 = vector.broadcast %cst_5 : f32 to vector<24x32xf32>
    %9 = arith.maximumf %7, %8 : vector<24x32xf32>
    %10 = arith.truncf %9 : vector<24x32xf32> to vector<24x32xbf16>
    %c0_6 = arith.constant 0 : index
    %c0_7 = arith.constant 0 : index
    %11 = vector.load %arg3[%c0_6, %c0_7] : memref<32x32xf32, #tpu.memory_space<vmem>>, vector<32x32xf32>
    %12 = arith.truncf %11 : vector<32x32xf32> to vector<32x32xbf16>
    %cst_8 = arith.constant dense<0.000000e+00> : vector<24x32xf32>
    %13 = tpu.matmul %10, %12, %cst_8 {dimension_numbers = #tpu.dot_dimension_numbers<[1], [0], [0], [1], [0, 0, 1, 1], [], []>} : vector<24x32xbf16>, vector<32x32xbf16>, vector<24x32xf32> -> vector<24x32xf32>
    %c0_9 = arith.constant 0 : index
    %c0_10 = arith.constant 0 : index
    %14 = vector.load %arg4[%c0_9, %c0_10] : memref<1x32xf32, #tpu.memory_space<vmem>>, vector<1x32xf32>
    %15 = vector.broadcast %14 : vector<1x32xf32> to vector<24x32xf32>
    %16 = arith.addf %13, %15 : vector<24x32xf32>
    %cst_11 = arith.constant 0.000000e+00 : f32
    %17 = vector.broadcast %cst_11 : f32 to vector<24x32xf32>
    %18 = arith.maximumf %16, %17 : vector<24x32xf32>
    %c0_12 = arith.constant 0 : index
    %c0_13 = arith.constant 0 : index
    %19 = vector.load %arg5[%c0_12, %c0_13] : memref<32x32xf32, #tpu.memory_space<vmem>>, vector<32x32xf32>
    %20 = arith.truncf %19 : vector<32x32xf32> to vector<32x32xbf16>
    %cst_14 = arith.constant dense<0.000000e+00> : vector<24x32xf32>
    %21 = tpu.matmul %10, %20, %cst_14 {dimension_numbers = #tpu.dot_dimension_numbers<[1], [0], [0], [1], [0, 0, 1, 1], [], []>} : vector<24x32xbf16>, vector<32x32xbf16>, vector<24x32xf32> -> vector<24x32xf32>
    %c0_15 = arith.constant 0 : index
    %c0_16 = arith.constant 0 : index
    %22 = vector.load %arg6[%c0_15, %c0_16] : memref<1x32xf32, #tpu.memory_space<vmem>>, vector<1x32xf32>
    %23 = vector.broadcast %22 : vector<1x32xf32> to vector<24x32xf32>
    %24 = arith.addf %21, %23 : vector<24x32xf32>
    %cst_17 = arith.constant 0.000000e+00 : f32
    %25 = vector.broadcast %cst_17 : f32 to vector<24x32xf32>
    %26 = arith.maximumf %24, %25 : vector<24x32xf32>
    %27 = vector.extract_strided_slice %18 {offsets = [0, 0], sizes = [8, 32], strides = [1, 1]} : vector<24x32xf32> to vector<8x32xf32>
    %28 = vector.extract_strided_slice %26 {offsets = [8, 0], sizes = [8, 32], strides = [1, 1]} : vector<24x32xf32> to vector<8x32xf32>
    %29 = vector.extract_strided_slice %26 {offsets = [16, 0], sizes = [8, 32], strides = [1, 1]} : vector<24x32xf32> to vector<8x32xf32>
    %30 = tpu.iota {dimensions = array<i32: 0>} : vector<8x8xi32>
    %31 = tpu.iota {dimensions = array<i32: 1>} : vector<8x8xi32>
    %32 = arith.addi %30, %31 : vector<8x8xi32>
    %c7_i32 = arith.constant 7 : i32
    %33 = vector.broadcast %c7_i32 : i32 to vector<8x8xi32>
    %34 = arith.cmpi eq, %32, %33 : vector<8x8xi32>
    %35 = arith.extui %34 : vector<8x8xi1> to vector<8x8xi32>
    %36 = arith.sitofp %35 : vector<8x8xi32> to vector<8x8xf32>
    %cst_18 = arith.constant dense<0.000000e+00> : vector<8x32xf32>
    %37 = tpu.matmul %36, %27, %cst_18 {dimension_numbers = #tpu.dot_dimension_numbers<[1], [0], [0], [1], [0, 0, 1, 1], [], []>} : vector<8x8xf32>, vector<8x32xf32>, vector<8x32xf32> -> vector<8x32xf32>
    %cst_19 = arith.constant dense<0.000000e+00> : vector<8x32xf32>
    %38 = tpu.matmul %36, %28, %cst_19 {dimension_numbers = #tpu.dot_dimension_numbers<[1], [0], [0], [1], [0, 0, 1, 1], [], []>} : vector<8x8xf32>, vector<8x32xf32>, vector<8x32xf32> -> vector<8x32xf32>
    %c0_20 = arith.constant 0 : index
    %c0_21 = arith.constant 0 : index
    %39 = vector.load %arg7[%c0_20, %c0_21] : memref<8x1xf32, #tpu.memory_space<vmem>>, vector<8x1xf32>
    %40 = arith.subf %27, %28 : vector<8x32xf32>
    %cst_22 = arith.constant 9.99999997E-7 : f32
    %41 = vector.broadcast %cst_22 : f32 to vector<8x32xf32>
    %42 = arith.addf %40, %41 : vector<8x32xf32>
    %43 = arith.mulf %42, %42 : vector<8x32xf32>
    %cst_23 = arith.constant dense<0.000000e+00> : vector<8xf32>
    %44 = vector.multi_reduction <add>, %43, %cst_23 [1] : vector<8x32xf32> to vector<8xf32>
    %45 = vector.shape_cast %44 : vector<8xf32> to vector<8x1xf32>
    %46 = math.sqrt %45 : vector<8x1xf32>
    %47 = vector.shape_cast %27 : vector<8x32xf32> to vector<8x1x32xf32>
    %48 = vector.shape_cast %29 : vector<8x32xf32> to vector<1x8x32xf32>
    %49 = vector.broadcast %47 : vector<8x1x32xf32> to vector<8x8x32xf32>
    %50 = vector.broadcast %48 : vector<1x8x32xf32> to vector<8x8x32xf32>
    %51 = arith.subf %49, %50 : vector<8x8x32xf32>
    %cst_24 = arith.constant 9.99999997E-7 : f32
    %52 = vector.broadcast %cst_24 : f32 to vector<8x8x32xf32>
    %53 = arith.addf %51, %52 : vector<8x8x32xf32>
    %54 = arith.mulf %53, %53 : vector<8x8x32xf32>
    %cst_25 = arith.constant dense<0.000000e+00> : vector<8x8xf32>
    %55 = vector.multi_reduction <add>, %54, %cst_25 [2] : vector<8x8x32xf32> to vector<8x8xf32>
    %56 = math.sqrt %55 : vector<8x8xf32>
    %cst_26 = arith.constant dense<0x7F800000> : vector<8xf32>
    %57 = vector.multi_reduction <minimumf>, %56, %cst_26 [1] : vector<8x8xf32> to vector<8xf32>
    %58 = vector.shape_cast %57 : vector<8xf32> to vector<8x1xf32>
    %59 = arith.mulf %46, %39 : vector<8x1xf32>
    %60 = vector.shape_cast %58 : vector<8x1xf32> to vector<1x8x1xf32>
    %cst_27 = arith.constant dense<0x7F800000> : vector<1xf32>
    %61 = vector.multi_reduction <minimumf>, %60, %cst_27 [1, 2] : vector<1x8x1xf32> to vector<1xf32>
    %62 = vector.shape_cast %61 : vector<1xf32> to vector<1x1x1xf32>
    %63 = vector.extract %62[0, 0, 0] : f32 from vector<1x1x1xf32>
    %64 = vector.shape_cast %58 : vector<8x1xf32> to vector<1x8x1xf32>
    %cst_28 = arith.constant dense<0xFF800000> : vector<1xf32>
    %65 = vector.multi_reduction <maximumf>, %64, %cst_28 [1, 2] : vector<1x8x1xf32> to vector<1xf32>
    %66 = vector.shape_cast %65 : vector<1xf32> to vector<1x1x1xf32>
    %67 = vector.extract %66[0, 0, 0] : f32 from vector<1x1x1xf32>
    %cst_29 = arith.constant 0.000000e+00 : f32
    %68 = vector.broadcast %cst_29 : f32 to vector<8x1xf32>
    %69 = arith.cmpf oge, %39, %68 : vector<8x1xf32>
    %70 = vector.broadcast %63 : f32 to vector<8x1xf32>
    %71 = arith.mulf %39, %70 : vector<8x1xf32>
    %72 = vector.broadcast %67 : f32 to vector<8x1xf32>
    %73 = arith.mulf %39, %72 : vector<8x1xf32>
    %74 = arith.select %69, %71, %73 : vector<8x1xi1>, vector<8x1xf32>
    %75 = arith.subf %59, %74 : vector<8x1xf32>
    %cst_30 = arith.constant 2.000000e-01 : f32
    %76 = vector.broadcast %cst_30 : f32 to vector<8x1xf32>
    %77 = arith.addf %75, %76 : vector<8x1xf32>
    %cst_31 = arith.constant 0.000000e+00 : f32
    %78 = vector.broadcast %cst_31 : f32 to vector<8x1xf32>
    %79 = arith.maximumf %77, %78 : vector<8x1xf32>
    %80 = vector.shape_cast %79 : vector<8x1xf32> to vector<1x8x1xf32>
    %cst_32 = arith.constant dense<0.000000e+00> : vector<1xf32>
    %81 = vector.multi_reduction <add>, %80, %cst_32 [1, 2] : vector<1x8x1xf32> to vector<1xf32>
    %82 = vector.shape_cast %81 : vector<1xf32> to vector<1x1x1xf32>
    %83 = vector.extract %82[0, 0, 0] : f32 from vector<1x1x1xf32>
    %cst_33 = arith.constant 8.000000e+00 : f32
    %84 = arith.divf %83, %cst_33 : f32
    %85 = arith.subf %37, %38 : vector<8x32xf32>
    %cst_34 = arith.constant 9.99999997E-7 : f32
    %86 = vector.broadcast %cst_34 : f32 to vector<8x32xf32>
    %87 = arith.addf %85, %86 : vector<8x32xf32>
    %88 = arith.mulf %87, %87 : vector<8x32xf32>
    %cst_35 = arith.constant dense<0.000000e+00> : vector<8xf32>
    %89 = vector.multi_reduction <add>, %88, %cst_35 [1] : vector<8x32xf32> to vector<8xf32>
    %90 = vector.shape_cast %89 : vector<8xf32> to vector<8x1xf32>
    %91 = math.sqrt %90 : vector<8x1xf32>
    %92 = vector.shape_cast %37 : vector<8x32xf32> to vector<8x1x32xf32>
    %93 = vector.shape_cast %29 : vector<8x32xf32> to vector<1x8x32xf32>
    %94 = vector.broadcast %92 : vector<8x1x32xf32> to vector<8x8x32xf32>
    %95 = vector.broadcast %93 : vector<1x8x32xf32> to vector<8x8x32xf32>
    %96 = arith.subf %94, %95 : vector<8x8x32xf32>
    %cst_36 = arith.constant 9.99999997E-7 : f32
    %97 = vector.broadcast %cst_36 : f32 to vector<8x8x32xf32>
    %98 = arith.addf %96, %97 : vector<8x8x32xf32>
    %99 = arith.mulf %98, %98 : vector<8x8x32xf32>
    %cst_37 = arith.constant dense<0.000000e+00> : vector<8x8xf32>
    %100 = vector.multi_reduction <add>, %99, %cst_37 [2] : vector<8x8x32xf32> to vector<8x8xf32>
    %101 = math.sqrt %100 : vector<8x8xf32>
    %cst_38 = arith.constant dense<0x7F800000> : vector<8xf32>
    %102 = vector.multi_reduction <minimumf>, %101, %cst_38 [1] : vector<8x8xf32> to vector<8xf32>
    %103 = vector.shape_cast %102 : vector<8xf32> to vector<8x1xf32>
    %104 = arith.mulf %91, %39 : vector<8x1xf32>
    %105 = vector.shape_cast %103 : vector<8x1xf32> to vector<1x8x1xf32>
    %cst_39 = arith.constant dense<0x7F800000> : vector<1xf32>
    %106 = vector.multi_reduction <minimumf>, %105, %cst_39 [1, 2] : vector<1x8x1xf32> to vector<1xf32>
    %107 = vector.shape_cast %106 : vector<1xf32> to vector<1x1x1xf32>
    %108 = vector.extract %107[0, 0, 0] : f32 from vector<1x1x1xf32>
    %109 = vector.shape_cast %103 : vector<8x1xf32> to vector<1x8x1xf32>
    %cst_40 = arith.constant dense<0xFF800000> : vector<1xf32>
    %110 = vector.multi_reduction <maximumf>, %109, %cst_40 [1, 2] : vector<1x8x1xf32> to vector<1xf32>
    %111 = vector.shape_cast %110 : vector<1xf32> to vector<1x1x1xf32>
    %112 = vector.extract %111[0, 0, 0] : f32 from vector<1x1x1xf32>
    %cst_41 = arith.constant 0.000000e+00 : f32
    %113 = vector.broadcast %cst_41 : f32 to vector<8x1xf32>
    %114 = arith.cmpf oge, %39, %113 : vector<8x1xf32>
    %115 = vector.broadcast %108 : f32 to vector<8x1xf32>
    %116 = arith.mulf %39, %115 : vector<8x1xf32>
    %117 = vector.broadcast %112 : f32 to vector<8x1xf32>
    %118 = arith.mulf %39, %117 : vector<8x1xf32>
    %119 = arith.select %114, %116, %118 : vector<8x1xi1>, vector<8x1xf32>
    %120 = arith.subf %104, %119 : vector<8x1xf32>
    %cst_42 = arith.constant 2.000000e-01 : f32
    %121 = vector.broadcast %cst_42 : f32 to vector<8x1xf32>
    %122 = arith.addf %120, %121 : vector<8x1xf32>
    %cst_43 = arith.constant 0.000000e+00 : f32
    %123 = vector.broadcast %cst_43 : f32 to vector<8x1xf32>
    %124 = arith.maximumf %122, %123 : vector<8x1xf32>
    %125 = vector.shape_cast %124 : vector<8x1xf32> to vector<1x8x1xf32>
    %cst_44 = arith.constant dense<0.000000e+00> : vector<1xf32>
    %126 = vector.multi_reduction <add>, %125, %cst_44 [1, 2] : vector<1x8x1xf32> to vector<1xf32>
    %127 = vector.shape_cast %126 : vector<1xf32> to vector<1x1x1xf32>
    %128 = vector.extract %127[0, 0, 0] : f32 from vector<1x1x1xf32>
    %cst_45 = arith.constant 8.000000e+00 : f32
    %129 = arith.divf %128, %cst_45 : f32
    %c0_46 = arith.constant 0 : index
    %130 = memref.load %arg8[%c0_46] : memref<2xf32, #tpu.memory_space<smem>>
    %131 = arith.mulf %130, %84 : f32
    %c1 = arith.constant 1 : index
    %132 = memref.load %arg8[%c1] : memref<2xf32, #tpu.memory_space<smem>>
    %133 = arith.mulf %132, %129 : f32
    %134 = arith.addf %131, %133 : f32
    %c0_47 = arith.constant 0 : index
    %135 = memref.load %arg9[%c0_47] : memref<1xf32, #tpu.memory_space<smem>>
    memref.store %134, %arg9[%c0_47] : memref<1xf32, #tpu.memory_space<smem>>
    return
  }
}

</mosaic_0001>

<bundles_post_ra>
// kernel: my_model_forward.1
= control target key start
LH: loop header
LB: loop body
LE: loop exit
PB: predicated region body
PF: predicated region fallthrough
CT: control target
= control target key end

     0   :  { %14 = vsyncpa [#allocation4], 0  ;;  %s1518_s0 = inlined_call_operand.vmem [shape: f32[24,40], index: 0, kind: input, shape index: {}]   ;;  %s1519_s1 = inlined_call_operand.vmem [shape: f32[40,32], index: 1, kind: input, shape index: {}]   ;;  %s1520_s2 = inlined_call_operand.vmem [shape: f32[1,32], index: 2, kind: input, shape index: {}]   ;;  %s1521_s3 = inlined_call_operand.vmem [shape: f32[32,32], index: 3, kind: input, shape index: {}]   ;;  %s1522_s4 = inlined_call_operand.vmem [shape: f32[1,32], index: 4, kind: input, shape index: {}]   ;;  %s1523_s5 = inlined_call_operand.vmem [shape: f32[32,32], index: 5, kind: input, shape index: {}]   ;;  %s1524_s6 = inlined_call_operand.vmem [shape: f32[1,32], index: 6, kind: input, shape index: {}]   ;;  %s1525_s7 = inlined_call_operand.vmem [shape: f32[8,1], index: 7, kind: input, shape index: {}]   ;;  %s1526_s8 = inlined_call_operand.vmem [shape: f32[2], index: 8, kind: input, shape index: {}]   ;;  %s1527_s9 = inlined_call_operand.hbm [shape: f32[1], index: 9, kind: output, shape index: {}]  }
   0x1   :  { %15 = vsyncpa [#allocation3], 0  ;;  %s38_s11 = sshll.u32 %s1526_s8, 4  ;;  %s39_s11 = int_to_ptr.vmem [resolvable:$true] %s38_s11 }
   0x2   :  { %s1151_s12 = scalar_lea.vmem %s39_s11, 16  ;;  %p1156_p1 = scmp.lt.s32.totalorder %s39_s11, %s39_s11 }
   0x3   :  { %p1152_p0 = scmp.ne.s32.totalorder %s39_s11, %s1151_s12  ;;  %p1157_p2 = scmp.lt.s32.totalorder %s1151_s12, %s1151_s12 }
   0x5   :  { %p1158_p3 = por %p1157_p2, %p1156_p1 }
   0x7   :  { %p1159_p4 = pnand %p1158_p3, %p1152_p0 }
   0x9   :  { %1162 = shalt.err (!%p1159_p4)
}
   0xa   :  { %s1177_s13 = smov [#allocation2]  }
   0xb   :  { %41 = dma.vmem_to_smem %s39_s11, 16, %s1177_s13, [#allocation4]  }
   0xc   :  { %1173 = dma.done.wait [#allocation4], 16  }
   0xd   :  { %1174 = vsyncadd [#allocation4], 4294967280 }
   0xe   :  { %45 = sfence }
   0xf   :  { %v52_v0 = vld [vmem:[%s1519_s1] sm:$0xff]  ;;  %v53_v1 = vld [vmem:[%s1519_s1 + $0x8] sm:$0xff]  ;;  %v54_v2 = vld [vmem:[%s1519_s1 + $0x10] sm:$0xff]  ;;  %vm67_vm0 = vcmask 326656   ;;  %vm74_vm1 = vcmask 1043456   ;;  %vm1528_vm2 = vcmask 261120   ;;  %v260_v39 = vlaneseq }
  0x10   :  { %v57_v3 = vpack.c.bf16 %v53_v1, %v52_v0  ;;  %v55_v4 = vld [vmem:[%s1519_s1 + $0x18] sm:$0xff]  ;;  %v47_v5 = vld [vmem:[%s1518_s0] sm:$0xff]  ;;  %v48_v8 = vld [vmem:[%s1518_s0 + $0x8] sm:$0xff]  ;;  %v1178_v40 = vmov 0.0   ;;  %vm1179_vm3 = vmmov 0   ;;  %vm1529_vm5 = vcmask 64512  }
  0x11   :  { %v58_v6 = vpack.c.bf16 %v55_v4, %v54_v2  ;;  %v56_v7 = vld [vmem:[%s1519_s1 + $0x20] sm:$0xff]  ;;  %v50_v9 = vpack.c.bf16 %v48_v8, %v47_v5  ;;  %v49_v11 = vld [vmem:[%s1518_s0 + $0x10] sm:$0xff]  ;;  %v132_v15 = vld [vmem:[%s1521_s3 + $0x8] sm:$0xff]  ;;  %v261_v41 = vshrl.u32 %v260_v39, 7  ;;  %v263_v42 = vand.u32 127, %v260_v39  ;;  %s1010_s28 = sld [smem:[#allocation2]] }
  0x12   :  { %1061 = vmatprep.subr.bf16.mxu0 %v57_v3  ;;  %v59_v10 = vpack.c.bf16 %v56_v7, %v56_v7  ;;  %v51_v13 = vpack.c.bf16 %v49_v11, %v49_v11  ;;  %v131_v14 = vld [vmem:[%s1521_s3] sm:$0xff]  ;;  %v133_v17 = vld [vmem:[%s1521_s3 + $0x10] sm:$0xff]  ;;  %v134_v18 = vld [vmem:[%s1521_s3 + $0x18] sm:$0xff]  ;;  %v1180_v44 = vmov 1966171168   ;;  %vm660_vm6 = vcmask 1041409  }
  0x13   :  { %1062 = vmatpush3.bf16.msra.mxu0 %v57_v3  ;;  %1067 = vmatprep.mubr.msk.bf16.mxu0 %vm67_vm0, %v50_v9  ;;  %v135_v16 = vpack.c.bf16 %v132_v15, %v131_v14  ;;  %v136_v19 = vpack.c.bf16 %v134_v18, %v133_v17  ;;  %v198_v20 = vld [vmem:[%s1523_s5] sm:$0xff]  ;;  %v199_v21 = vld [vmem:[%s1523_s5 + $0x8] sm:$0xff]  ;;  %v200_v34 = vld [vmem:[%s1523_s5 + $0x10] sm:$0xff]  ;;  %v1291_v43 = vsub.s32 %v263_v42, %v261_v41  ;;  %v429_v45 = vunpack.c.l.s4 %v1180_v44  ;;  %s1043_s1 = sld [smem:[#allocation2 + $0x1]]  ;;  %s1163_s15 = scalar_lea.hbm %s1527_s9, 16 }
  0x14   :  { %1063 = vmatprep.subr.bf16.mxu0 %v58_v6  ;;  %v76_v12 = vsel %vm74_vm1, %v59_v10, 0  ;;  %v202_v22 = vpack.c.bf16 %v199_v21, %v198_v20  ;;  %v1031_v23 = vld [vmem:[%s1520_s2] ss:$0 sm:$0xff]  ;;  %v201_v35 = vld [vmem:[%s1523_s5 + $0x18] sm:$0xff]  ;;  %v264_v46 = vadd.s32 %v263_v42, %v261_v41  ;;  %v1298_v58 = vsub.s32 0, %v261_v41  ;;  %p1164_p5 = scmp.ne.s32.totalorder %s1527_s9, %s1163_s15  ;;  %p1167_p6 = scmp.lt.u32.totalorder %s1163_s15, %s1527_s9 }
  0x15   :  { %1071 = vmatprep.subr.bf16.mxu1 %v135_v16  ;;  %v203_v38 = vpack.c.bf16 %v201_v35, %v200_v34  ;;  %v430_v47 = vunpack.c.0.s8 %v429_v45  ;;  %v1034_v48 = vld [vmem:[%s1522_s4] ss:$0 sm:$0xff]  ;;  %vm662_vm7 = vcmask 1042434   ;;  %vm664_vm9 = vcmask 1043459  }
  0x16   :  { %1072 = vmatpush3.bf16.msra.mxu1 %v135_v16  ;;  %vm265_vm4 = vcmp.eq.s32.totalorder %v264_v46, 7  ;;  %v1037_v59 = vld [vmem:[%s1524_s6] ss:$0 sm:$0xff]  ;;  %vm666_vm13 = vcmask 1044484   ;;  %p1169_p7 = pnand %p1167_p6, %p1164_p5 }
  0x17   :  { %1064 = vmatpush3.bf16.msra.mxu0 %v58_v6  ;;  %1073 = vmatprep.subr.bf16.mxu1 %v136_v19  ;;  %v1296_v53 = vsub.s32 %v430_v47, %v261_v41  ;;  %v1040_v56 = vsel %vm265_vm4, 1.0, %v1178_v40  ;;  %vm668_vm4 = vcmask 1045509  }
  0x18   :  { %1097 = vmatprep.subr.msk.bf16.mxu0 %vm74_vm1, %v59_v10 }
  0x1a   :  { %1074 = vmatpush3.bf16.msra.mxu1 %v136_v19 }
  0x1b   :  { %1066 = vmatpush3.bf16.msra.mxu0 %v76_v12  ;;  %1079 = vmatprep.subr.bf16.mxu1 %v202_v22 }
  0x1c   :  { %1087 = vmatprep.subr.mxu0 %v1178_v40 }
  0x1e   :  { %1068 = vmatmul.mubr.msk.bf16.vlgmr.msra.gmra.mrb[0].mxu0 %vm67_vm0, %v51_v13 }
  0x1f   :  { %1089 = vmatprep.mubr.msk.f32.mxu0 %vm1179_vm3, %v1178_v40 }
  0xf1   :  { %v1069_v24 = vpop.f32.mrb[0].mxu0 }
  0xf2   :  { %v121_v25 = vadd.f32 %v1069_v24, %v1031_v23  ;;  %v112_v26 = vpop.f32.mrb[1].mxu0 }
  0xf3   :  { %v113_v27 = vadd.f32 %v1031_v23, %v112_v26  ;;  %v1070_v28 = vpop.f32.mrb[2].mxu0 }
  0xf4   :  { %v115_v29 = vpop.f32.mrb[3].mxu0  ;;  %v128_v31 = vmax.f32 %v121_v25, 0.0 }
  0xf5   :  { %v116_v30 = vadd.f32 %v1031_v23, %v115_v29  ;;  %v126_v32 = vmax.f32 %v113_v27, 0.0 }
  0xf6   :  { %v130_v37 = vpack.c.bf16 %v128_v31, %v128_v31 }
  0xf7   :  { %v127_v33 = vmax.f32 %v116_v30, 0.0 }
  0xf9   :  { %v129_v36 = vpack.c.bf16 %v127_v33, %v126_v32 }
  0xfb   :  { %1075 = vmatprep.mubr.msk.bf16.mxu1 %vm1528_vm2, %v129_v36 }
  0xfc   :  { %1076 = vmatmul.mubr.msk.bf16.vlgmr.msra.gmra.mrb[0].mxu1 %vm1528_vm2, %v130_v37 }
  0xfd   :  { %1080 = vmatpush3.bf16.msra.mxu1 %v202_v22  ;;  %1083 = vmatprep.mubr.msk.bf16.mxu1 %vm1528_vm2, %v129_v36 }
  0xfe   :  { %1081 = vmatprep.subr.bf16.mxu1 %v203_v38 }
 0x101   :  { %1082 = vmatpush3.bf16.msra.mxu1 %v203_v38 }
 0x104   :  { %1084 = vmatmul.mubr.msk.bf16.vlgmr.msra.gmra.mrb[4].mxu1 %vm1528_vm2, %v130_v37 }
 0x1cf   :  { %v1077_v49 = vpop.f32.mrb[0].mxu1 }
 0x1d0   :  { %v185_v50 = vpop.f32.mrb[1].mxu1 }
 0x1d1   :  { %v186_v51 = vadd.f32 %v1034_v48, %v185_v50  ;;  %v1078_v52 = vpop.f32.mrb[2].mxu1 }
 0x1d2   :  { %v188_v54 = vpop.f32.mrb[3].mxu1 }
 0x1d3   :  { %v197_v55 = vmax.f32 %v186_v51, 0.0 }
 0x1d5   :  { %v427_v57 = vcombine.high %v197_v55, %v197_v55  ;;  %1088 = vmatpush3.msra.mxu0 %v197_v55  ;;  %v434_v60 = vrot.slane %v197_v55, %v1296_v53 }
 0x1d6   :  { %1090 = vmatmul.mubr.msk.f32.vlgmr.msra.gmra.mrb[4].mxu0 %vm1529_vm5, %v1040_v56  ;;  %1092 = vmatprep.subr.mxu0 %v1178_v40 }
 0x1d7   :  { %v1085_v61 = vpop.f32.mrb[4].mxu1  ;;  %1094 = vmatprep.mubr.msk.f32.mxu0 %vm1179_vm3, %v1178_v40  ;;  %v450_v62 = vrot.slane %v434_v60, %v1296_v53  ;;  %v442_v63 = vcombine.high %v434_v60, %v434_v60  ;;  %v441_v0 = vrot.slane %v427_v57, %v1296_v53 }
 0x1d8   :  { %v253_v1 = vadd.f32 %v1085_v61, %v1037_v59  ;;  %v245_v2 = vpop.f32.mrb[5].mxu1 }
 0x1d9   :  { %v1086_v3 = vpop.f32.mrb[6].mxu1  ;;  %v479_v4 = vrot.slane %v450_v62, %v1298_v58  ;;  %v472_v5 = vcombine.high %v450_v62, %v450_v62  ;;  %v464_v6 = vrot.slane %v442_v63, %v1296_v53  ;;  %v457_v7 = vrot.slane %v441_v0, %v1296_v53 }
 0x1da   :  { %v1311_v8 = vmax.f32 %v253_v1, 0.0  ;;  %v247_v9 = vpop.f32.mrb[7].mxu1  ;;  %v443_v10 = vcombine.high %v441_v0, %v441_v0 }
 0x1db   :  { %v248_v11 = vadd.f32 %v1037_v59, %v247_v9  ;;  %v487_v12 = vrot.slane %v472_v5, %v1298_v58  ;;  %v483_v13 = vrot.slane %v464_v6, %v1298_v58  ;;  %v474_v14 = vcombine.high %v464_v6, %v464_v6 }
 0x1dc   :  { %v516_v15 = vsub.f32 %v479_v4, %v1311_v8  ;;  %v495_v16 = vrot.slane %v457_v7, %v1298_v58  ;;  %v471_v17 = vrot.slane %v443_v10, %v1296_v53  ;;  %v473_v18 = vcombine.high %v457_v7, %v457_v7 }
 0x1dd   :  { %v258_v19 = vmax.f32 %v248_v11, 0.0  ;;  %v518_v20 = vsub.f32 %v487_v12, %v1311_v8  ;;  %v517_v21 = vsub.f32 %v483_v13, %v1311_v8  ;;  %v491_v22 = vrot.slane %v474_v14, %v1298_v58 }
 0x1de   :  { %v524_v23 = vadd.f32 1e-06, %v516_v15  ;;  %v520_v24 = vsub.f32 %v495_v16, %v1311_v8  ;;  %v499_v25 = vrot.slane %v471_v17, %v1298_v58  ;;  %v503_v26 = vrot.slane %v473_v18, %v1298_v58 }
 0x1df   :  { %v413_v27 = vsub.f32 %v197_v55, %v258_v19  ;;  %1093 = vmatpush3.msra.mxu0 %v258_v19  ;;  %v526_v28 = vadd.f32 1e-06, %v518_v20  ;;  %v525_v29 = vadd.f32 1e-06, %v517_v21  ;;  %v519_v30 = vsub.f32 %v491_v22, %v1311_v8 }
 0x1e0   :  { %1095 = vmatmul.mubr.msk.f32.vlgmr.msra.gmra.mrb[6].mxu0 %vm1529_vm5, %v1040_v56  ;;  %v532_v31 = vmul.f32 %v524_v23, %v524_v23  ;;  %v521_v32 = vsub.f32 %v499_v25, %v1311_v8  ;;  %v475_v35 = vcombine.high %v471_v17, %v471_v17  ;;  %v528_v38 = vadd.f32 1e-06, %v520_v24 }
 0x1e1   :  { %v534_v33 = vmul.f32 %v526_v28, %v526_v28  ;;  %v527_v34 = vadd.f32 1e-06, %v519_v30  ;;  %v533_v37 = vmul.f32 %v525_v29, %v525_v29  ;;  %v522_v39 = vsub.f32 %v503_v26, %v1311_v8 }
 0x1e2   :  { %v540_v36 = vsel %vm1528_vm2, %v532_v31, 0.0  ;;  %v529_v42 = vadd.f32 1e-06, %v521_v32  ;;  %v507_v44 = vrot.slane %v475_v35, %v1298_v58  ;;  %v536_v47 = vmul.f32 %v528_v38, %v528_v38 }
 0x1e3   :  { %541 = vadd.xlane.f32.xlu0 %v540_v36  ;;  %v546_v40 = vsel %vm1528_vm2, %v534_v33, 0.0  ;;  %v535_v41 = vmul.f32 %v527_v34, %v527_v34  ;;  %v543_v46 = vsel %vm1528_vm2, %v533_v37, 0.0  ;;  %v530_v48 = vadd.f32 1e-06, %v522_v39 }
 0x1e4   :  { %547 = vadd.xlane.f32.xlu1 %v546_v40  ;;  %v523_v45 = vsub.f32 %v507_v44, %v1311_v8  ;;  %v537_v50 = vmul.f32 %v529_v42, %v529_v42  ;;  %v552_v52 = vsel %vm1528_vm2, %v536_v47, 0.0  ;;  %v414_v57 = vadd.f32 1e-06, %v413_v27 }
 0x1e5   :  { %v549_v49 = vsel %vm1528_vm2, %v535_v41, 0.0  ;;  %v538_v54 = vmul.f32 %v530_v48, %v530_v48 }
 0x1e6   :  { %v531_v51 = vadd.f32 1e-06, %v523_v45  ;;  %v555_v55 = vsel %vm1528_vm2, %v537_v50, 0.0  ;;  %v415_v61 = vmul.f32 %v414_v57, %v414_v57 }
 0x1e7   :  { %544 = vadd.xlane.f32.xlu0 %v543_v46  ;;  %v558_v59 = vsel %vm1528_vm2, %v538_v54, 0.0 }
 0x1e8   :  { %550 = vadd.xlane.f32.xlu1 %v549_v49  ;;  %v539_v56 = vmul.f32 %v531_v51, %v531_v51  ;;  %v416_v62 = vsel %vm1528_vm2, %v415_v61, 0.0 }
 0x1ea   :  { %v561_v60 = vsel %vm1528_vm2, %v539_v56, 0.0 }
 0x1eb   :  { %553 = vadd.xlane.f32.xlu0 %v552_v52 }
 0x1ec   :  { %556 = vadd.xlane.f32.xlu1 %v555_v55 }
 0x1ef   :  { %559 = vadd.xlane.f32.xlu0 %v558_v59 }
 0x1f0   :  { %562 = vadd.xlane.f32.xlu1 %v561_v60 }
 0x1f4   :  { %417 = vadd.xlane.f32.xlu1 %v416_v62 }
 0x270   :  { %v542_v63 = vpop.xlane.xlu0 %541 }
 0x271   :  { %1115 = vrsqrt.f32 %v542_v63  ;;  %v548_v0 = vpop.xlane.xlu1 %547  ;;  %vm566_vm8 = vcmp.eq.f32.partialorder %v542_v63, inf  ;;  %vm568_vm10 = vcmp.eq.f32.partialorder %v542_v63, 0.0  ;;  %v569_v14 = vand.u32 2147483648, %v542_v63 }
 0x272   :  { %1117 = vrsqrt.f32 %v548_v0  ;;  %vm580_vm11 = vcmp.eq.f32.partialorder %v548_v0, inf  ;;  %vm582_vm12 = vcmp.eq.f32.partialorder %v548_v0, 0.0  ;;  %v583_v16 = vand.u32 2147483648, %v548_v0 }
 0x274   :  { %v545_v1 = vpop.xlane.xlu0 %544 }
 0x275   :  { %1119 = vrsqrt.f32 %v545_v1  ;;  %v551_v2 = vpop.xlane.xlu1 %550  ;;  %vm573_vm14 = vcmp.eq.f32.partialorder %v545_v1, inf  ;;  %vm575_vm15 = vcmp.eq.f32.partialorder %v545_v1, 0.0  ;;  %v576_v19 = vand.u32 2147483648, %v545_v1 }
 0x276   :  { %1121 = vrsqrt.f32 %v551_v2  ;;  %vm587_vm0 = vcmp.eq.f32.partialorder %v551_v2, inf  ;;  %vm589_vm1 = vcmp.eq.f32.partialorder %v551_v2, 0.0  ;;  %v590_v24 = vand.u32 2147483648, %v551_v2 }
 0x278   :  { %v554_v3 = vpop.xlane.xlu0 %553 }
 0x279   :  { %1123 = vrsqrt.f32 %v554_v3  ;;  %v1339_v4 = vpop.xlane.xlu1 %556  ;;  %vm594_vm3 = vcmp.eq.f32.partialorder %v554_v3, inf  ;;  %v597_v28 = vand.u32 2147483648, %v554_v3 }
 0x27a   :  { %1125 = vrsqrt.f32 %v1339_v4  ;;  %v604_v38 = vand.u32 2147483648, %v1339_v4 }
 0x27b   :  { %v1116_v5 = vpop.eup %1115 }
 0x27c   :  { %v1118_v6 = vpop.eup %1117  ;;  %v565_v7 = vmul.f32 %v1116_v5, %v542_v63  ;;  %v1342_v9 = vpop.xlane.xlu0 %559 }
 0x27d   :  { %v579_v10 = vmul.f32 %v1118_v6, %v548_v0  ;;  %1127 = vrsqrt.f32 %v1342_v9  ;;  %v1345_v11 = vpop.xlane.xlu1 %562  ;;  %v611_v50 = vand.u32 2147483648, %v1342_v9 }
 0x27e   :  { %v567_v12 = vsel %vm566_vm8, %v542_v63, %v565_v7  ;;  %1129 = vrsqrt.f32 %v1345_v11  ;;  %vm596_vm8 = vcmp.eq.f32.partialorder %v554_v3, 0.0  ;;  %v618_v55 = vand.u32 2147483648, %v1345_v11 }
 0x27f   :  { %v1120_v13 = vpop.eup %1119  ;;  %v581_v15 = vsel %vm580_vm11, %v548_v0, %v579_v10  ;;  %v570_v20 = vsel %vm568_vm10, %v569_v14, %v567_v12  ;;  %vm601_vm10 = vcmp.eq.f32.partialorder %v1339_v4, inf  ;;  %vm603_vm11 = vcmp.eq.f32.partialorder %v1339_v4, 0.0 }
 0x280   :  { %v1122_v17 = vpop.eup %1121  ;;  %v572_v18 = vmul.f32 %v1120_v13, %v545_v1  ;;  %v584_v22 = vsel %vm582_vm12, %v583_v16, %v581_v15  ;;  %v631_v30 = vrot.slane %v570_v20, %v1291_v43  ;;  %vm608_vm12 = vcmp.eq.f32.partialorder %v1342_v9, inf }
 0x281   :  { %v586_v21 = vmul.f32 %v1122_v17, %v551_v2  ;;  %v639_v34 = vrot.slane %v584_v22, %v1291_v43 }
 0x282   :  { %v574_v23 = vsel %vm573_vm14, %v545_v1, %v572_v18  ;;  %vm610_vm14 = vcmp.eq.f32.partialorder %v1342_v9, 0.0 }
 0x283   :  { %v1124_v25 = vpop.eup %1123  ;;  %v577_v26 = vsel %vm575_vm15, %v576_v19, %v574_v23  ;;  %v588_v27 = vsel %vm587_vm0, %v551_v2, %v586_v21  ;;  %vm615_vm15 = vcmp.eq.f32.partialorder %v1345_v11, inf  ;;  %vm617_vm0 = vcmp.eq.f32.partialorder %v1345_v11, 0.0 }
 0x284   :  { %v1126_v29 = vpop.eup %1125  ;;  %v635_v31 = vrot.slane %v577_v26, %v1291_v43  ;;  %v591_v32 = vsel %vm589_vm1, %v590_v24, %v588_v27  ;;  %v593_v33 = vmul.f32 %v1124_v25, %v554_v3  ;;  %vm670_vm1 = vcmask 1046534  }
 0x285   :  { %v600_v35 = vmul.f32 %v1126_v29, %v1339_v4  ;;  %v643_v36 = vrot.slane %v591_v32, %v1291_v43 }
 0x286   :  { %v595_v37 = vsel %vm594_vm3, %v554_v3, %v593_v33  ;;  %v661_v39 = vsel %vm660_vm6, %v635_v31, %v631_v30  ;;  %vm672_vm3 = vcmask 1047559  }
 0x287   :  { %v1128_v40 = vpop.eup %1127  ;;  %v602_v41 = vsel %vm601_vm10, %v1339_v4, %v600_v35  ;;  %v598_v42 = vsel %vm596_vm8, %v597_v28, %v595_v37  ;;  %v663_v44 = vsel %vm662_vm7, %v639_v34, %v661_v39 }
 0x288   :  { %v1130_v45 = vpop.eup %1129  ;;  %v607_v46 = vmul.f32 %v1128_v40, %v1342_v9  ;;  %v605_v47 = vsel %vm603_vm11, %v604_v38, %v602_v41  ;;  %v647_v48 = vrot.slane %v598_v42, %v1291_v43  ;;  %v665_v49 = vsel %vm664_vm9, %v643_v36, %v663_v44 }
 0x289   :  { %v614_v51 = vmul.f32 %v1130_v45, %v1345_v11  ;;  %v651_v52 = vrot.slane %v605_v47, %v1291_v43 }
 0x28a   :  { %v609_v54 = vsel %vm608_vm12, %v1342_v9, %v607_v46  ;;  %v667_v56 = vsel %vm666_vm13, %v647_v48, %v665_v49 }
 0x28b   :  { %v612_v57 = vsel %vm610_vm14, %v611_v50, %v609_v54  ;;  %v616_v59 = vsel %vm615_vm15, %v1345_v11, %v614_v51  ;;  %v669_v63 = vsel %vm668_vm4, %v651_v52, %v667_v56 }
 0x28c   :  { %v619_v60 = vsel %vm617_vm0, %v618_v55, %v616_v59  ;;  %v655_v61 = vrot.slane %v612_v57, %v1291_v43 }
 0x28d   :  { %v659_v62 = vrot.slane %v619_v60, %v1291_v43 }
 0x28e   :  { %v671_v0 = vsel %vm670_vm1, %v655_v61, %v669_v63 }
 0x28f   :  { %v673_v1 = vsel %vm672_vm3, %v659_v62, %v671_v0 }
 0x290   :  { %v675_v2 = vsel %vm1529_vm5, %v673_v1, inf }
 0x291   :  { %676 = vmin.xlane.f32.xlu0 %v675_v2 }
 0x2a9   :  { %v1381_v3 = vpop.f32.mrb[4].mxu0 }
 0x2aa   :  { %v730_v4 = vcombine.high %v1381_v3, %v1381_v3  ;;  %v737_v5 = vrot.slane %v1381_v3, %v1296_v53  ;;  %v1091_v6 = vpop.f32.mrb[5].mxu0 }
 0x2ac   :  { %v744_v7 = vrot.slane %v730_v4, %v1296_v53  ;;  %v745_v9 = vcombine.high %v737_v5, %v737_v5  ;;  %v753_v10 = vrot.slane %v737_v5, %v1296_v53 }
 0x2ae   :  { %v746_v11 = vcombine.high %v744_v7, %v744_v7  ;;  %v782_v12 = vrot.slane %v753_v10, %v1298_v58  ;;  %v767_v13 = vrot.slane %v745_v9, %v1296_v53  ;;  %v775_v14 = vcombine.high %v753_v10, %v753_v10 }
 0x2af   :  { %v760_v15 = vrot.slane %v744_v7, %v1296_v53 }
 0x2b0   :  { %v819_v16 = vsub.f32 %v782_v12, %v1311_v8  ;;  %v786_v17 = vrot.slane %v767_v13, %v1298_v58  ;;  %v777_v18 = vcombine.high %v767_v13, %v767_v13  ;;  %v790_v19 = vrot.slane %v775_v14, %v1298_v58  ;;  %v418_v12 = vpop.xlane.xlu1 %417 }
 0x2b1   :  { %v774_v20 = vrot.slane %v746_v11, %v1296_v53  ;;  %v798_v21 = vrot.slane %v760_v15, %v1298_v58  ;;  %v776_v22 = vcombine.high %v760_v15, %v760_v15  ;;  %1131 = vrsqrt.f32 %v418_v12 }
 0x2b2   :  { %v827_v23 = vadd.f32 1e-06, %v819_v16  ;;  %v820_v24 = vsub.f32 %v786_v17, %v1311_v8  ;;  %v794_v25 = vrot.slane %v777_v18, %v1298_v58  ;;  %v821_v26 = vsub.f32 %v790_v19, %v1311_v8 }
 0x2b3   :  { %v1400_v27 = vpop.f32.mrb[6].mxu0  ;;  %v802_v28 = vrot.slane %v774_v20, %v1298_v58  ;;  %v823_v29 = vsub.f32 %v798_v21, %v1311_v8  ;;  %v778_v30 = vcombine.high %v774_v20, %v774_v20  ;;  %v806_v31 = vrot.slane %v776_v22, %v1298_v58 }
 0x2b4   :  { %v716_v53 = vsub.f32 %v1381_v3, %v1400_v27  ;;  %v835_v32 = vmul.f32 %v827_v23, %v827_v23  ;;  %v828_v33 = vadd.f32 1e-06, %v820_v24  ;;  %v822_v34 = vsub.f32 %v794_v25, %v1311_v8  ;;  %v1096_v35 = vpop.f32.mrb[7].mxu0  ;;  %v1429_v24 = vld [vmem:[%s1525_s7] sm:$0xff] }
 0x2b5   :  { %v829_v36 = vadd.f32 1e-06, %v821_v26  ;;  %v824_v37 = vsub.f32 %v802_v28, %v1311_v8  ;;  %v810_v38 = vrot.slane %v778_v30, %v1298_v58  ;;  %v831_v44 = vadd.f32 1e-06, %v823_v29 }
 0x2b6   :  { %v843_v39 = vsel %vm1528_vm2, %v835_v32, 0.0  ;;  %v836_v40 = vmul.f32 %v828_v33, %v828_v33  ;;  %v830_v41 = vadd.f32 1e-06, %v822_v34  ;;  %v825_v49 = vsub.f32 %v806_v31, %v1311_v8 }
 0x2b7   :  { %844 = vadd.xlane.f32.xlu1 %v843_v39  ;;  %v832_v42 = vadd.f32 1e-06, %v824_v37  ;;  %v826_v45 = vsub.f32 %v810_v38, %v1311_v8  ;;  %v837_v48 = vmul.f32 %v829_v36, %v829_v36  ;;  %v839_v54 = vmul.f32 %v831_v44, %v831_v44 }
 0x2b8   :  { %v846_v46 = vsel %vm1528_vm2, %v836_v40, 0.0  ;;  %v838_v47 = vmul.f32 %v830_v41, %v830_v41  ;;  %v833_v55 = vadd.f32 1e-06, %v825_v49  ;;  %vm421_vm8 = vcmp.eq.f32.partialorder %v418_v12, inf }
 0x2b9   :  { %847 = vadd.xlane.f32.xlu0 %v846_v46  ;;  %v840_v51 = vmul.f32 %v832_v42, %v832_v42  ;;  %v834_v58 = vadd.f32 1e-06, %v826_v45  ;;  %v849_v52 = vsel %vm1528_vm2, %v837_v48, 0.0  ;;  %v855_v59 = vsel %vm1528_vm2, %v839_v54, 0.0 }
 0x2ba   :  { %v852_v50 = vsel %vm1528_vm2, %v838_v47, 0.0  ;;  %v841_v60 = vmul.f32 %v833_v55, %v833_v55  ;;  %v424_v21 = vand.u32 2147483648, %v418_v12  ;;  %vm423_vm10 = vcmp.eq.f32.partialorder %v418_v12, 0.0 }
 0x2bb   :  { %853 = vadd.xlane.f32.xlu1 %v852_v50  ;;  %v858_v56 = vsel %vm1528_vm2, %v840_v51, 0.0  ;;  %v842_v57 = vmul.f32 %v834_v58, %v834_v58  ;;  %v1132_v14 = vpop.eup %1131  ;;  %vm693_vm5 = vcmp.ge.f32.partialorder %v1429_v24, 0.0 }
 0x2bc   :  { %v861_v61 = vsel %vm1528_vm2, %v841_v60, 0.0  ;;  %v420_v16 = vmul.f32 %v1132_v14, %v418_v12 }
 0x2bd   :  { %850 = vadd.xlane.f32.xlu0 %v849_v52  ;;  %v864_v8 = vsel %vm1528_vm2, %v842_v57, 0.0 }
 0x2be   :  { %v422_v20 = vsel %vm421_vm8, %v418_v12, %v420_v16 }
 0x2bf   :  { %859 = vadd.xlane.f32.xlu1 %v858_v56  ;;  %v425_v25 = vsel %vm423_vm10, %v424_v21, %v422_v20 }
 0x2c0   :  { %v1437_v32 = vmul.f32 %v425_v25, %v1429_v24 }
 0x2c1   :  { %856 = vadd.xlane.f32.xlu0 %v855_v59 }
 0x2c3   :  { %865 = vadd.xlane.f32.xlu1 %v864_v8 }
 0x2c5   :  { %862 = vadd.xlane.f32.xlu0 %v861_v61 }
 0x31e   :  { %v677_v62 = vpop.xlane.xlu0 %676 }
 0x31f   :  { %v679_v63 = vrot.slane %v677_v62, 4 }
 0x321   :  { %v680_v0 = vmin.f32 %v677_v62, %v679_v63  ;;  %v687_v1 = vmax.f32 %v677_v62, %v679_v63 }
 0x323   :  { %v681_v2 = vrot.slane %v680_v0, 2  ;;  %v688_v4 = vrot.slane %v687_v1, 2 }
 0x325   :  { %v682_v5 = vmin.f32 %v680_v0, %v681_v2  ;;  %v689_v6 = vmax.f32 %v687_v1, %v688_v4 }
 0x327   :  { %v683_v7 = vrot.slane %v682_v5, 1  ;;  %v690_v9 = vrot.slane %v689_v6, 1 }
 0x329   :  { %v684_v10 = vmin.f32 %v682_v5, %v683_v7  ;;  %v691_v11 = vmax.f32 %v689_v6, %v690_v9 }
 0x32b   :  { %1098 = vpush %v684_v10 }
 0x32c   :  { %1100 = vpush %v691_v11 }
 0x344   :  { %v845_v13 = vpop.xlane.xlu1 %844 }
 0x345   :  { %1133 = vrsqrt.f32 %v845_v13  ;;  %vm869_vm11 = vcmp.eq.f32.partialorder %v845_v13, inf  ;;  %vm871_vm12 = vcmp.eq.f32.partialorder %v845_v13, 0.0  ;;  %v872_v34 = vand.u32 2147483648, %v845_v13 }
 0x346   :  { %v848_v15 = vpop.xlane.xlu0 %847 }
 0x347   :  { %1135 = vrsqrt.f32 %v848_v15  ;;  %vm876_vm14 = vcmp.eq.f32.partialorder %v848_v15, inf  ;;  %v879_v35 = vand.u32 2147483648, %v848_v15  ;;  %vm878_vm15 = vcmp.eq.f32.partialorder %v848_v15, 0.0 }
 0x348   :  { %v854_v17 = vpop.xlane.xlu1 %853 }
 0x349   :  { %1137 = vrsqrt.f32 %v854_v17  ;;  %vm890_vm0 = vcmp.eq.f32.partialorder %v854_v17, inf  ;;  %vm892_vm8 = vcmp.eq.f32.partialorder %v854_v17, 0.0  ;;  %v893_v41 = vand.u32 2147483648, %v854_v17 }
 0x34a   :  { %v851_v18 = vpop.xlane.xlu0 %850 }
 0x34b   :  { %1139 = vrsqrt.f32 %v851_v18  ;;  %vm883_vm10 = vcmp.eq.f32.partialorder %v851_v18, inf  ;;  %vm885_vm2 = vcmp.eq.f32.partialorder %v851_v18, 0.0  ;;  %v886_v47 = vand.u32 2147483648, %v851_v18 }
 0x34c   :  { %v1420_v19 = vpop.xlane.xlu1 %859 }
 0x34d   :  { %1141 = vrsqrt.f32 %v1420_v19  ;;  %v907_v51 = vand.u32 2147483648, %v1420_v19 }
 0x34e   :  { %v1423_v22 = vpop.xlane.xlu0 %856 }
 0x34f   :  { %v1134_v23 = vpop.eup %1133  ;;  %1143 = vrsqrt.f32 %v1423_v22  ;;  %v900_v8 = vand.u32 2147483648, %v1423_v22 }
 0x350   :  { %v868_v26 = vmul.f32 %v1134_v23, %v845_v13  ;;  %v1431_v28 = vpop.xlane.xlu1 %865 }
 0x351   :  { %v1136_v29 = vpop.eup %1135  ;;  %1145 = vrsqrt.f32 %v1431_v28  ;;  %v921_v61 = vand.u32 2147483648, %v1431_v28 }
 0x352   :  { %v875_v30 = vmul.f32 %v1136_v29, %v848_v15  ;;  %v1434_v31 = vpop.xlane.xlu0 %862  ;;  %v870_v36 = vsel %vm869_vm11, %v845_v13, %v868_v26  ;;  %vm904_vm11 = vcmp.eq.f32.partialorder %v1420_v19, inf }
 0x353   :  { %v1138_v33 = vpop.eup %1137  ;;  %1147 = vrsqrt.f32 %v1434_v31  ;;  %v873_v46 = vsel %vm871_vm12, %v872_v34, %v870_v36  ;;  %vm899_vm12 = vcmp.eq.f32.partialorder %v1423_v22, 0.0  ;;  %v914_v13 = vand.u32 2147483648, %v1434_v31 }
 0x354   :  { %v877_v37 = vsel %vm876_vm14, %v848_v15, %v875_v30  ;;  %v889_v38 = vmul.f32 %v1138_v33, %v854_v17  ;;  %vm906_vm14 = vcmp.eq.f32.partialorder %v1420_v19, 0.0  ;;  %v934_v55 = vrot.slane %v873_v46, %v1291_v43 }
 0x355   :  { %v1140_v39 = vpop.eup %1139  ;;  %v880_v40 = vsel %vm878_vm15, %v879_v35, %v877_v37  ;;  %vm897_vm15 = vcmp.eq.f32.partialorder %v1423_v22, inf }
 0x356   :  { %v891_v42 = vsel %vm890_vm0, %v854_v17, %v889_v38  ;;  %v882_v44 = vmul.f32 %v1140_v39, %v851_v18  ;;  %v938_v48 = vrot.slane %v880_v40, %v1291_v43  ;;  %vm918_vm0 = vcmp.eq.f32.partialorder %v1431_v28, inf }
 0x357   :  { %v1142_v45 = vpop.eup %1141  ;;  %v894_v52 = vsel %vm892_vm8, %v893_v41, %v891_v42  ;;  %vm920_vm8 = vcmp.eq.f32.partialorder %v1431_v28, 0.0 }
 0x358   :  { %v884_v49 = vsel %vm883_vm10, %v851_v18, %v882_v44  ;;  %v903_v50 = vmul.f32 %v1142_v45, %v1420_v19  ;;  %v946_v0 = vrot.slane %v894_v52, %v1291_v43  ;;  %v963_v1 = vsel %vm660_vm6, %v938_v48, %v934_v55 }
 0x359   :  { %v1144_v58 = vpop.eup %1143  ;;  %v887_v54 = vsel %vm885_vm2, %v886_v47, %v884_v49  ;;  %vm911_vm2 = vcmp.eq.f32.partialorder %v1434_v31, inf  ;;  %vm913_vm6 = vcmp.eq.f32.partialorder %v1434_v31, 0.0 }
 0x35a   :  { %v942_v56 = vrot.slane %v887_v54, %v1291_v43  ;;  %v905_v57 = vsel %vm904_vm11, %v1420_v19, %v903_v50  ;;  %v896_v59 = vmul.f32 %v1144_v58, %v1423_v22 }
 0x35b   :  { %v1146_v60 = vpop.eup %1145  ;;  %v908_v6 = vsel %vm906_vm14, %v907_v51, %v905_v57 }
 0x35c   :  { %v898_v62 = vsel %vm897_vm15, %v1423_v22, %v896_v59  ;;  %v917_v63 = vmul.f32 %v1146_v60, %v1431_v28  ;;  %s1099_s7 = spop %1098  ;;  %v964_v7 = vsel %vm662_vm7, %v942_v56, %v963_v1  ;;  %v954_v20 = vrot.slane %v908_v6, %v1291_v43 }
 0x35d   :  { %v1148_v2 = vpop.eup %1147  ;;  %v694_v4 = vstv %s1099_s7  ;;  %s1101_s24 = spop %1100  ;;  %v901_v5 = vsel %vm899_vm12, %v900_v8, %v898_v62  ;;  %v965_v18 = vsel %vm664_vm9, %v946_v0, %v964_v7  ;;  %vm702_vm7 = vcmask 7168  }
 0x35e   :  { %v910_v9 = vmul.f32 %v1148_v2, %v1434_v31  ;;  %v695_v10 = vmul.f32 %v694_v4, %v1429_v24  ;;  %v696_v11 = vstv %s1101_s24  ;;  %v919_v12 = vsel %vm918_vm0, %v1431_v28, %v917_v63 }
 0x35f   :  { %v697_v14 = vmul.f32 %v696_v11, %v1429_v24  ;;  %v950_v15 = vrot.slane %v901_v5, %v1291_v43  ;;  %v922_v17 = vsel %vm920_vm8, %v921_v61, %v919_v12  ;;  %v717_v28 = vadd.f32 1e-06, %v716_v53 }
 0x360   :  { %v912_v16 = vsel %vm911_vm2, %v1434_v31, %v910_v9  ;;  %v962_v26 = vrot.slane %v922_v17, %v1291_v43  ;;  %vm1530_vm9 = vcmask 64512  }
 0x361   :  { %v915_v19 = vsel %vm913_vm6, %v914_v13, %v912_v16  ;;  %v966_v21 = vsel %vm666_vm13, %v950_v15, %v965_v18  ;;  %v698_v22 = vsel %vm693_vm5, %v695_v10, %v697_v14  ;;  %v718_v36 = vmul.f32 %v717_v28, %v717_v28 }
 0x362   :  { %v958_v23 = vrot.slane %v915_v19, %v1291_v43  ;;  %v699_v25 = vsub.f32 %v1437_v32, %v698_v22  ;;  %v967_v29 = vsel %vm668_vm4, %v954_v20, %v966_v21  ;;  %vm1531_vm13 = vcmask 261120  }
 0x363   :  { %v719_v43 = vsel %vm1531_vm13, %v718_v36, 0.0 }
 0x364   :  { %v968_v30 = vsel %vm670_vm1, %v958_v23, %v967_v29  ;;  %v700_v31 = vadd.f32 0.2, %v699_v25 }
 0x365   :  { %v969_v33 = vsel %vm672_vm3, %v962_v26, %v968_v30 }
 0x366   :  { %v971_v34 = vsel %vm1530_vm9, %v969_v33, inf  ;;  %v701_v35 = vmax.f32 %v700_v31, 0.0 }
 0x367   :  { %972 = vmin.xlane.f32.xlu1 %v971_v34 }
 0x368   :  { %v703_v32 = vsel %vm702_vm7, %v701_v35, 0.0 }
 0x369   :  { %704 = vadd.xlane.f32.xlu0 %v703_v32 }
 0x36d   :  { %720 = vadd.xlane.f32.xlu0 %v719_v43 }
 0x3f4   :  { %v973_v37 = vpop.xlane.xlu1 %972 }
 0x3f5   :  { %v975_v3 = vrot.slane %v973_v37, 4 }
 0x3f6   :  { %v705_v27 = vpop.xlane.xlu0 %704 }
 0x3f7   :  { %v976_v53 = vmin.f32 %v973_v37, %v975_v3  ;;  %v983_v38 = vmax.f32 %v973_v37, %v975_v3  ;;  %v706_v39 = vrot.slane %v705_v27, 4 }
 0x3f9   :  { %v707_v40 = vadd.f32 %v706_v39, %v705_v27  ;;  %v977_v41 = vrot.slane %v976_v53, 2  ;;  %v984_v42 = vrot.slane %v983_v38, 2 }
 0x3fa   :  { %v721_v54 = vpop.xlane.xlu0 %720 }
 0x3fb   :  { %v708_v44 = vrot.slane %v707_v40, 2  ;;  %v978_v45 = vmin.f32 %v976_v53, %v977_v41  ;;  %v985_v46 = vmax.f32 %v983_v38, %v984_v42  ;;  %1149 = vrsqrt.f32 %v721_v54 }
 0x3fc   :  { %vm724_vm4 = vcmp.eq.f32.partialorder %v721_v54, inf  ;;  %v727_v59 = vand.u32 2147483648, %v721_v54  ;;  %vm726_vm1 = vcmp.eq.f32.partialorder %v721_v54, 0.0 }
 0x3fd   :  { %v709_v47 = vadd.f32 %v708_v44, %v707_v40  ;;  %v979_v48 = vrot.slane %v978_v45, 1  ;;  %v986_v49 = vrot.slane %v985_v46, 1 }
 0x3ff   :  { %v710_v50 = vrot.slane %v709_v47, 1  ;;  %v980_v51 = vmin.f32 %v978_v45, %v979_v48  ;;  %v987_v52 = vmax.f32 %v985_v46, %v986_v49 }
 0x401   :  { %v711_v58 = vadd.f32 %v710_v50, %v709_v47 }
 0x403   :  { %1102 = vpush %v711_v58 }
 0x404   :  { %1104 = vpush %v980_v51 }
 0x405   :  { %1106 = vpush %v987_v52  ;;  %v1150_v55 = vpop.eup %1149 }
 0x406   :  { %v723_v56 = vmul.f32 %v1150_v55, %v721_v54 }
 0x408   :  { %v725_v57 = vsel %vm724_vm4, %v721_v54, %v723_v56 }
 0x409   :  { %v728_v8 = vsel %vm726_vm1, %v727_v59, %v725_v57 }
 0x40a   :  { %v974_v0 = vmul.f32 %v728_v8, %v1429_v24 }
 0x434   :  { %s1497_s25 = spop %1102 }
 0x435   :  { %s1105_s26 = spop %1104  ;;  %s715_s29 = smul.f32 0.125, %s1497_s25 }
 0x436   :  { %v989_v60 = vstv %s1105_s26  ;;  %s1107_s27 = spop %1106 }
 0x437   :  { %v990_v61 = vmul.f32 %v989_v60, %v1429_v24  ;;  %v991_v62 = vstv %s1107_s27  ;;  %s1011_s11 = smul.f32 %s1010_s28, %s715_s29 }
 0x438   :  { %v992_v63 = vmul.f32 %v991_v62, %v1429_v24 }
 0x43a   :  { %v993_v1 = vsel %vm693_vm5, %v990_v61, %v992_v63 }
 0x43b   :  { %v994_v2 = vsub.f32 %v974_v0, %v993_v1 }
 0x43d   :  { %v995_v4 = vadd.f32 0.2, %v994_v2 }
 0x43f   :  { %v996_v5 = vmax.f32 %v995_v4, 0.0 }
 0x441   :  { %v997_v6 = vsel %vm702_vm7, %v996_v5, 0.0 }
 0x442   :  { %998 = vadd.xlane.f32.xlu1 %v997_v6 }
 0x4cf   :  { %v999_v7 = vpop.xlane.xlu1 %998 }
 0x4d0   :  { %v1000_v9 = vrot.slane %v999_v7, 4 }
 0x4d2   :  { %v1001_v10 = vadd.f32 %v1000_v9, %v999_v7 }
 0x4d4   :  { %v1002_v11 = vrot.slane %v1001_v10, 2 }
 0x4d6   :  { %v1003_v12 = vadd.f32 %v1002_v11, %v1001_v10 }
 0x4d8   :  { %v1004_v13 = vrot.slane %v1003_v12, 1 }
 0x4da   :  { %v1005_v14 = vadd.f32 %v1004_v13, %v1003_v12 }
 0x4dc   :  { %1108 = vpush %v1005_v14 }
 0x50d   :  { %s1109_s30 = spop %1108 }
 0x50e   :  { %s1009_s10 = smul.f32 0.125, %s1109_s30 }
 0x510   :  { %s1013_s12 = smul.f32 %s1043_s1, %s1009_s10 }
 0x512   :  { %s1014_s0 = sadd.f32 %s1013_s12, %s1011_s11 }
 0x514   :  { %1016 = sst [smem:[#allocation5]] %s1014_s0 }
 0x515   :  { %1172 = shalt.err (!%p1169_p7)
}
 0x516   :  { %s1181_s3 = smov [#allocation5]  }
 0x517   :  { %1024 = dma.smem_to_hbm %s1181_s3, 16, %s1527_s9, [#allocation3]  }
 0x518   :  { %1175 = dma.done.wait [#allocation3], 16  }
 0x519   :  { %1176 = vsyncadd [#allocation3], 4294967280 }
 0x51a   :  { %1028 = sfence }
 0x51b   :  { %1029 = vsyncpa [#allocation3], 1 }
 0x51c   :  { %1030 = vsyncpa [#allocation4], 1 }

</bundles_post_ra>
